<compile_context>
chip_gen: v5e
topology: v5e:2x2
jax: 0.10.0
libtpu: 0.0.40
codegen_flags: <defaults>
</compile_context>

<pallas_src>
import functools
from typing import NamedTuple

import jax
import jax.numpy as jnp
from jax.experimental import pallas as pl
from jax.experimental.pallas import tpu as pltpu


# ----------------------------------------------------------------------------
# Kernel
# ----------------------------------------------------------------------------
def _transcoder_kernel(x_ref, we_ref, be_ref, wd_ref, bd_ref,
                       out_ref, code_ref, acc_ref):
    l = pl.program_id(1)
    nl = pl.num_programs(1)

    # encode tile: (TB, D_in) @ (D_in, TL) -> f32, then f32 bias + ReLU epilogue.
    x = x_ref[...].astype(we_ref.dtype)          # in-kernel cast (hidden under MXU)
    pre = jnp.dot(x, we_ref[...], preferred_element_type=jnp.float32)
    code_f32 = jnp.maximum(pre + be_ref[...], 0.0)

    # Store code in compute dtype; decode consumes the SAME rounded values, so
    # out == decode(returned code) exactly.
    code_c = code_f32.astype(code_ref.dtype)
    code_ref[...] = code_c

    # decode partial: (TB, TL) @ (TL, D_out), accumulated in f32 VMEM scratch.
    partial = jnp.dot(code_c.astype(wd_ref.dtype), wd_ref[...],
                      preferred_element_type=jnp.float32)

    @pl.when(l == 0)
    def _():
        acc_ref[...] = partial                    # direct write: no zero-init pass

    @pl.when(l > 0)
    def _():
        acc_ref[...] += partial

    @pl.when(l == nl - 1)
    def _():
        out_ref[...] = (acc_ref[...] + bd_ref[...]).astype(out_ref.dtype)


# ----------------------------------------------------------------------------
# Tiling helpers (pure Python on static shapes)
# ----------------------------------------------------------------------------
def _round_up(n, m):
    return ((n + m - 1) // m) * m


def _pad_axis(a, axis, target):
    pad = target - a.shape[axis]
    if pad == 0:
        return a
    widths = [(0, 0)] * a.ndim
    widths[axis] = (0, pad)
    return jnp.pad(a, widths)


@functools.lru_cache(maxsize=None)
def _vmem_budgets():
    """Per-generation VMEM request / tile budget (v5e/v6e: 128 MiB phys,
    v7x: 64 MiB phys per TC)."""
    phys = 64 * 1024 * 1024  # conservative default (v7x per-TC)
    try:
        info = pltpu.get_tpu_info()
        cap = getattr(info, "vmem_capacity_bytes", None)
        if cap:
            phys = int(cap)
    except Exception:
        pass
    limit = min(phys * 3 // 4, 100 * 1024 * 1024)   # 128MiB->96MiB, 64MiB->48MiB
    budget = int(limit * 0.85)
    return limit, budget


def _vmem_estimate(tb, tl, d_in_pad, d_out_pad, cbytes):
    """Estimate VMEM for one grid step. Double-buffer the pipelined operands;
    the l-resident out block, b_dec (constant index) and the scratch acc are
    effectively single-buffered."""
    xbytes = 4   # worst case (f32 activations)
    obytes = 4   # out stored in x.dtype (worst case f32)
    x_t = 2 * tb * d_in_pad * xbytes
    we_t = 2 * d_in_pad * tl * cbytes
    be_t = 2 * 8 * tl * 4
    wd_t = 2 * tl * d_out_pad * cbytes
    bd_t = 1 * 8 * d_out_pad * 4
    code_t = 2 * tb * tl * cbytes
    out_t = 1 * tb * d_out_pad * obytes
    acc = tb * d_out_pad * 4
    return x_t + we_t + be_t + wd_t + bd_t + code_t + out_t + acc


def _choose_tiling(d_in_pad, d_out_pad, latent, cbytes, budget):
    """Pick (tb_max, tl) from the VMEM budget: prefer a large batch tile (512)
    and the largest latent tile <= 2048; shrink TB as a fallback for huge
    D_in/D_out."""
    tl_cap = min(_round_up(latent, 128), 2048)
    tb = 512
    while tb >= 64:
        tl = tl_cap
        while tl >= 128:
            if _vmem_estimate(tb, tl, d_in_pad, d_out_pad, cbytes) <= budget:
                return tb, tl
            tl -= 128
        tb //= 2
    # TODO(synk): for extreme D_in/D_out (>~16K) also tile the D_out axis.
    return 64, 128


# ----------------------------------------------------------------------------
# Parameters (hoisted, one-time prep)
# ----------------------------------------------------------------------------
class TranscoderParams(NamedTuple):
    w_enc_p: jax.Array   # (D_in_pad, L_pad), compute dtype, perm folded in
    b_enc_p: jax.Array   # (1, L_pad), f32, perm folded in
    w_dec_c: jax.Array   # (L_pad, D_out_pad), compute dtype
    b_dec_c: jax.Array   # (1, D_out_pad), f32
    d_in: int
    latent: int
    d_out: int
    tl: int
    tb_max: int


def prepare_transcoder_params(w_enc, b_enc, w_dec, b_dec, perm_indices,
                              compute_dtype=jnp.bfloat16):
    """One-time prep (run per weight/perm change, NOT per forward):
    fold the code-column permutation into the encoder params
    (code[:, perm] == relu(x @ W_enc[:, perm] + b_enc[perm])), cast the MXU
    operands to compute_dtype, and zero-pad everything to lane-dense tiles."""
    d_in, latent = w_enc.shape
    d_out = w_dec.shape[1]

    d_in_pad = _round_up(d_in, 128)
    d_out_pad = _round_up(d_out, 128)

    cbytes = jnp.dtype(compute_dtype).itemsize
    _, budget = _vmem_budgets()
    tb_max, tl = _choose_tiling(d_in_pad, d_out_pad, latent, cbytes, budget)
    l_pad = _round_up(latent, tl)

    w_enc_p = w_enc[:, perm_indices].astype(compute_dtype)
    b_enc_p = b_enc[perm_indices].astype(jnp.float32).reshape(1, -1)

    w_enc_p = _pad_axis(_pad_axis(w_enc_p, 0, d_in_pad), 1, l_pad)
    b_enc_p = _pad_axis(b_enc_p, 1, l_pad)
    w_dec_c = _pad_axis(_pad_axis(w_dec.astype(compute_dtype), 0, l_pad), 1, d_out_pad)
    b_dec_c = _pad_axis(b_dec.astype(jnp.float32).reshape(1, -1), 1, d_out_pad)

    return TranscoderParams(w_enc_p, b_enc_p, w_dec_c, b_dec_c,
                            d_in, latent, d_out, tl, tb_max)


# ----------------------------------------------------------------------------
# Forward
# ----------------------------------------------------------------------------
@functools.partial(jax.jit,
                   static_argnames=("d_in", "latent", "d_out", "tl", "tb_max"))
def _forward_impl(x, w_enc_p, b_enc_p, w_dec_c, b_dec_c, *,
                  d_in, latent, d_out, tl, tb_max):
    out_dtype = x.dtype
    code_dtype = w_enc_p.dtype              # compute dtype
    B = x.shape[0]
    d_in_pad, l_pad = w_enc_p.shape
    d_out_pad = w_dec_c.shape[1]

    tb = tb_max if B >= tb_max else _round_up(max(B, 8), 8)
    b_pad = _round_up(B, tb)

    xp = x
    if b_pad != B or d_in_pad != x.shape[1]:
        xp = jnp.pad(x, ((0, b_pad - B), (0, d_in_pad - x.shape[1])))

    nb = b_pad // tb
    nl = l_pad // tl
    vmem_limit, _ = _vmem_budgets()

    out, code = pl.pallas_call(
        _transcoder_kernel,
        out_shape=(
            jax.ShapeDtypeStruct((b_pad, d_out_pad), out_dtype),   # out
            jax.ShapeDtypeStruct((b_pad, l_pad), code_dtype),      # code (permuted)
        ),
        grid_spec=pltpu.PrefetchScalarGridSpec(
            num_scalar_prefetch=0,
            grid=(nb, nl),
            in_specs=[
                pl.BlockSpec((tb, d_in_pad), lambda b, l: (b, 0)),     # x
                pl.BlockSpec((d_in_pad, tl), lambda b, l: (0, l)),     # W_enc[:, perm]
                pl.BlockSpec((1, tl), lambda b, l: (0, l)),            # b_enc[perm]
                pl.BlockSpec((tl, d_out_pad), lambda b, l: (l, 0)),    # W_dec
                pl.BlockSpec((1, d_out_pad), lambda b, l: (0, 0)),     # b_dec
            ],
            out_specs=(
                pl.BlockSpec((tb, d_out_pad), lambda b, l: (b, 0)),    # out (resident over l)
                pl.BlockSpec((tb, tl), lambda b, l: (b, l)),           # code
            ),
            scratch_shapes=[pltpu.VMEM((tb, d_out_pad), jnp.float32)],
        ),
        compiler_params=pltpu.CompilerParams(
            dimension_semantics=("parallel", "arbitrary"),
            vmem_limit_bytes=vmem_limit,
        ),
    )(xp, w_enc_p, b_enc_p, w_dec_c, b_dec_c)

    return out[:B, :d_out], code[:B, :latent]


def sparse_transcoder_forward(x, params: TranscoderParams):
    """Fused forward: returns (out, code) exactly as SparseTranscoder.forward
    (code already column-permuted via the folded encoder params)."""
    return _forward_impl(
        x, params.w_enc_p, params.b_enc_p, params.w_dec_c, params.b_dec_c,
        d_in=params.d_in, latent=params.latent, d_out=params.d_out,
        tl=params.tl, tb_max=params.tb_max)


def permute_align(inp, target):
    """JAX port of permute_align: indices s.t. inp[indices] ~= target."""
    ind1 = jnp.argsort(inp)
    ind2 = jnp.argsort(target)
    rank2 = jnp.argsort(ind2)
    return ind1[rank2]


# ----------------------------------------------------------------------------
# Self-test
# ----------------------------------------------------------------------------
if __name__ == "__main__":
    # Small shapes; LATENT and B deliberately non-aligned to exercise padding.
    B, D_IN, LATENT, D_OUT = 6, 128, 192, 128
    key = jax.random.PRNGKey(0)
    kx, k1, k2, k3, k4, k5 = jax.random.split(key, 6)

    x = jax.random.normal(kx, (B, D_IN), dtype=jnp.float32)

    # Encoder parameters (+ its decoder rows, used only for loading()).
    w_enc_e = jax.random.normal(k1, (D_IN, LATENT), dtype=jnp.float32) * 0.05
    b_enc_e = jax.random.normal(k2, (LATENT,), dtype=jnp.float32) * 0.01
    w_dec_e = jax.random.normal(k3, (LATENT, D_IN), dtype=jnp.float32) * 0.05

    # Decoder parameters.
    w_dec_d = jax.random.normal(k4, (LATENT, D_OUT), dtype=jnp.float32) * 0.05
    b_dec_d = jax.random.normal(k5, (D_OUT,), dtype=jnp.float32) * 0.01

    # loading() = L2 norm of each latent's decoder row; set_perm() equivalent.
    # TODO(synk): loading()/permute_align stay in plain JAX (argsort has no useful Pallas form).
    enc_loading = jnp.linalg.norm(w_dec_e, axis=1)
    dec_loading = jnp.linalg.norm(w_dec_d, axis=1)
    perm = permute_align(enc_loading, dec_loading)

    # Pure-JAX reference (encode -> permute columns -> decode), f32.
    code_ref = jnp.maximum(x @ w_enc_e + b_enc_e, 0.0)[:, perm]
    out_ref = code_ref @ w_dec_d + b_dec_d

    # f32-compute path (tight check).
    p32 = prepare_transcoder_params(w_enc_e, b_enc_e, w_dec_d, b_dec_d, perm,
                                    compute_dtype=jnp.float32)
    out32, code32 = jax.block_until_ready(sparse_transcoder_forward(x, p32))
    assert out32.shape == (B, D_OUT) and code32.shape == (B, LATENT)
    assert jnp.allclose(code32, code_ref, atol=2e-3, rtol=2e-3)
    assert jnp.allclose(out32, out_ref, atol=2e-3, rtol=2e-3)

    # bf16-compute performance path (f32 accumulation; looser tolerance).
    pbf = prepare_transcoder_params(w_enc_e, b_enc_e, w_dec_d, b_dec_d, perm,
                                    compute_dtype=jnp.bfloat16)
    out_bf, code_bf = jax.block_until_ready(sparse_transcoder_forward(x, pbf))
    assert jnp.allclose(code_bf.astype(jnp.float32), code_ref, atol=8e-2, rtol=8e-2)
    assert jnp.allclose(out_bf, out_ref, atol=8e-2, rtol=8e-2)

    print("KERNEL_OK")
</pallas_src>

<mosaic_0001>
module attributes {stable_mosaic.version = 11 : i64} {
  func.func @_transcoder_kernel(%arg0: i32, %arg1: i32, %arg2: memref<8x128xf32, #tpu.memory_space<vmem>>, %arg3: memref<128x256xf32, #tpu.memory_space<vmem>>, %arg4: memref<1x256xf32, #tpu.memory_space<vmem>>, %arg5: memref<256x128xf32, #tpu.memory_space<vmem>>, %arg6: memref<1x128xf32, #tpu.memory_space<vmem>>, %arg7: memref<8x128xf32, #tpu.memory_space<vmem>>, %arg8: memref<8x256xf32, #tpu.memory_space<vmem>>, %arg9: memref<8x128xf32, #tpu.memory_space<vmem>>) attributes {dimension_semantics = [#tpu.dimension_semantics<parallel>, #tpu.dimension_semantics<arbitrary>], iteration_bounds = array<i64: 1, 1>, scalar_prefetch = 0 : i64, scratch_operands = 1 : i64, tpu.core_type = #tpu.core_type<tc>, window_params = [{transform_indices = @transform_0, window_bounds = array<i64: 8, 128>}, {transform_indices = @transform_1, window_bounds = array<i64: 128, 256>}, {transform_indices = @transform_2, window_bounds = array<i64: 1, 256>}, {transform_indices = @transform_3, window_bounds = array<i64: 256, 128>}, {pipeline_mode = #tpu.pipeline_mode<synchronous>, transform_indices = @transform_4, window_bounds = array<i64: 1, 128>}, {transform_indices = @transform_5, window_bounds = array<i64: 8, 128>}, {transform_indices = @transform_6, window_bounds = array<i64: 8, 256>}]} {
    %c0 = arith.constant 0 : index
    %c0_0 = arith.constant 0 : index
    %0 = vector.load %arg2[%c0, %c0_0] : memref<8x128xf32, #tpu.memory_space<vmem>>, vector<8x128xf32>
    %c0_1 = arith.constant 0 : index
    %c0_2 = arith.constant 0 : index
    %1 = vector.load %arg3[%c0_1, %c0_2] : memref<128x256xf32, #tpu.memory_space<vmem>>, vector<128x256xf32>
    %cst = arith.constant dense<0.000000e+00> : vector<8x256xf32>
    %2 = tpu.matmul %0, %1, %cst {dimension_numbers = #tpu.dot_dimension_numbers<[1], [0], [0], [1], [0, 0, 1, 1], [], []>} : vector<8x128xf32>, vector<128x256xf32>, vector<8x256xf32> -> vector<8x256xf32>
    %c0_3 = arith.constant 0 : index
    %c0_4 = arith.constant 0 : index
    %3 = vector.load %arg4[%c0_3, %c0_4] : memref<1x256xf32, #tpu.memory_space<vmem>>, vector<1x256xf32>
    %4 = vector.broadcast %3 : vector<1x256xf32> to vector<8x256xf32>
    %5 = arith.addf %2, %4 : vector<8x256xf32>
    %cst_5 = arith.constant 0.000000e+00 : f32
    %6 = vector.broadcast %cst_5 : f32 to vector<8x256xf32>
    %7 = arith.maximumf %5, %6 : vector<8x256xf32>
    %c0_6 = arith.constant 0 : index
    %c0_7 = arith.constant 0 : index
    %8 = vector.load %arg8[%c0_6, %c0_7] : memref<8x256xf32, #tpu.memory_space<vmem>>, vector<8x256xf32>
    tpu.vector_store %arg8[%c0_6, %c0_7], %7 {strides = array<i32>} : memref<8x256xf32, #tpu.memory_space<vmem>>, vector<8x256xf32>,
    %c0_8 = arith.constant 0 : index
    %c0_9 = arith.constant 0 : index
    %9 = vector.load %arg5[%c0_8, %c0_9] : memref<256x128xf32, #tpu.memory_space<vmem>>, vector<256x128xf32>
    %cst_10 = arith.constant dense<0.000000e+00> : vector<8x128xf32>
    %10 = tpu.matmul %7, %9, %cst_10 {dimension_numbers = #tpu.dot_dimension_numbers<[1], [0], [0], [1], [0, 0, 1, 1], [], []>} : vector<8x256xf32>, vector<256x128xf32>, vector<8x128xf32> -> vector<8x128xf32>
    %c0_i32 = arith.constant 0 : i32
    %11 = arith.cmpi eq, %arg1, %c0_i32 : i32
    %12 = arith.extui %11 : i1 to i32
    %c0_i32_11 = arith.constant 0 : i32
    %13 = arith.cmpi ne, %12, %c0_i32_11 : i32
    scf.if %13 {
      %c0_16 = arith.constant 0 : index
      %c0_17 = arith.constant 0 : index
      %20 = vector.load %arg9[%c0_16, %c0_17] : memref<8x128xf32, #tpu.memory_space<vmem>>, vector<8x128xf32>
      tpu.vector_store %arg9[%c0_16, %c0_17], %10 {strides = array<i32>} : memref<8x128xf32, #tpu.memory_space<vmem>>, vector<8x128xf32>,
    } else {
    }
    %c0_i32_12 = arith.constant 0 : i32
    %14 = arith.cmpi sgt, %arg1, %c0_i32_12 : i32
    %15 = arith.extui %14 : i1 to i32
    %c0_i32_13 = arith.constant 0 : i32
    %16 = arith.cmpi ne, %15, %c0_i32_13 : i32
    scf.if %16 {
      %c0_16 = arith.constant 0 : index
      %c0_17 = arith.constant 0 : index
      %20 = vector.load %arg9[%c0_16, %c0_17] : memref<8x128xf32, #tpu.memory_space<vmem>>, vector<8x128xf32>
      %21 = arith.addf %20, %10 : vector<8x128xf32>
      %c0_18 = arith.constant 0 : index
      %c0_19 = arith.constant 0 : index
      %22 = vector.load %arg9[%c0_18, %c0_19] : memref<8x128xf32, #tpu.memory_space<vmem>>, vector<8x128xf32>
      tpu.vector_store %arg9[%c0_18, %c0_19], %21 {strides = array<i32>} : memref<8x128xf32, #tpu.memory_space<vmem>>, vector<8x128xf32>,
    } else {
    }
    %c0_i32_14 = arith.constant 0 : i32
    %17 = arith.cmpi eq, %arg1, %c0_i32_14 : i32
    %18 = arith.extui %17 : i1 to i32
    %c0_i32_15 = arith.constant 0 : i32
    %19 = arith.cmpi ne, %18, %c0_i32_15 : i32
    scf.if %19 {
      %c0_16 = arith.constant 0 : index
      %c0_17 = arith.constant 0 : index
      %20 = vector.load %arg9[%c0_16, %c0_17] : memref<8x128xf32, #tpu.memory_space<vmem>>, vector<8x128xf32>
      %c0_18 = arith.constant 0 : index
      %c0_19 = arith.constant 0 : index
      %21 = vector.load %arg6[%c0_18, %c0_19] : memref<1x128xf32, #tpu.memory_space<vmem>>, vector<1x128xf32>
      %22 = vector.broadcast %21 : vector<1x128xf32> to vector<8x128xf32>
      %23 = arith.addf %20, %22 : vector<8x128xf32>
      %c0_20 = arith.constant 0 : index
      %c0_21 = arith.constant 0 : index
      %24 = vector.load %arg7[%c0_20, %c0_21] : memref<8x128xf32, #tpu.memory_space<vmem>>, vector<8x128xf32>
      tpu.vector_store %arg7[%c0_20, %c0_21], %23 {strides = array<i32>} : memref<8x128xf32, #tpu.memory_space<vmem>>, vector<8x128xf32>,
    } else {
    }
    return
  }
  func.func @transform_0(%arg0: i32, %arg1: i32) -> (i32, i32) {
    %c0_i32 = arith.constant 0 : i32
    %c0_i32_0 = arith.constant 0 : i32
    return %arg0, %c0_i32 : i32, i32
  }
  func.func @transform_1(%arg0: i32, %arg1: i32) -> (i32, i32) {
    %c0_i32 = arith.constant 0 : i32
    %c0_i32_0 = arith.constant 0 : i32
    return %c0_i32, %arg1 : i32, i32
  }
  func.func @transform_2(%arg0: i32, %arg1: i32) -> (i32, i32) {
    %c0_i32 = arith.constant 0 : i32
    %c0_i32_0 = arith.constant 0 : i32
    return %c0_i32, %arg1 : i32, i32
  }
  func.func @transform_3(%arg0: i32, %arg1: i32) -> (i32, i32) {
    %c0_i32 = arith.constant 0 : i32
    %c0_i32_0 = arith.constant 0 : i32
    return %arg1, %c0_i32 : i32, i32
  }
  func.func @transform_4(%arg0: i32, %arg1: i32) -> (i32, i32) {
    %c0_i32 = arith.constant 0 : i32
    %c0_i32_0 = arith.constant 0 : i32
    %c0_i32_1 = arith.constant 0 : i32
    return %c0_i32, %c0_i32_0 : i32, i32
  }
  func.func @transform_5(%arg0: i32, %arg1: i32) -> (i32, i32) {
    %c0_i32 = arith.constant 0 : i32
    %c0_i32_0 = arith.constant 0 : i32
    return %arg0, %c0_i32 : i32, i32
  }
  func.func @transform_6(%arg0: i32, %arg1: i32) -> (i32, i32) {
    %c0_i32 = arith.constant 0 : i32
    return %arg0, %arg1 : i32, i32
  }
}

</mosaic_0001>

<bundles_post_ra>
// kernel: _forward_impl.1
= control target key start
LH: loop header
LB: loop body
LE: loop exit
PB: predicated region body
PF: predicated region fallthrough
CT: control target
= control target key end

     0   :  { %12 = vsyncpa [#allocation4], 0  ;;  %s444_s0 = inlined_call_operand.vmem [shape: f32[8,128], index: 0, kind: input, shape index: {}]   ;;  %s445_s1 = inlined_call_operand.hbm [shape: f32[128,256], index: 1, kind: input, shape index: {}]   ;;  %s446_s2 = inlined_call_operand.vmem [shape: f32[1,256], index: 2, kind: input, shape index: {}]   ;;  %s447_s3 = inlined_call_operand.hbm [shape: f32[256,128], index: 3, kind: input, shape index: {}]   ;;  %s448_s4 = inlined_call_operand.vmem [shape: f32[1,128], index: 4, kind: input, shape index: {}]   ;;  %s449_s5 = inlined_call_operand.hbm [shape: f32[8,128], index: 5, kind: output, shape index: {0}]   ;;  %s450_s6 = inlined_call_operand.hbm [shape: f32[8,256], index: 6, kind: output, shape index: {1}]  }
   0x1   :  { %13 = vsyncpa [#allocation7], 0 }
   0x2   :  { %14 = vsyncpa [#allocation5], 0 }
   0x3   :  { %15 = vsyncpa [#allocation10], 0  ;;  %s22_s23 = sshll.u32 %s445_s1, 4  ;;  %s380_s24 = smov [#allocation3]   ;;  %s23_s23 = int_to_ptr.hbm [resolvable:$true] %s22_s23 }
   0x4   :  { %s24_s25 = sshll.u32 %s380_s24, 4  ;;  %s37_s28 = sshll.u32 %s447_s3, 4  ;;  %s25_s25 = int_to_ptr.vmem [resolvable:$true] %s24_s25  ;;  %s38_s28 = int_to_ptr.hbm [resolvable:$true] %s37_s28 }
   0x5   :  { %s381_s29 = smov 256   ;;  %s382_s30 = smov 16  }
   0x6   :  { %30 = dma.hbm_to_vmem [thread:$0]  %s23_s23, 4096, %s25_s25, [#allocation4], %s381_s29, %s381_s29, %s382_s30  }
   0x7   :  { %s383_s7 = smov [#allocation6]   ;;  %s384_s9 = smov 128  }
   0x8   :  { %s39_s8 = sshll.u32 %s383_s7, 4  ;;  %s385_s10 = smov 8   ;;  %s40_s8 = int_to_ptr.vmem [resolvable:$true] %s39_s8 }
   0x9   :  { %45 = dma.hbm_to_vmem [thread:$0]  %s38_s28, 4096, %s40_s8, [#allocation7], %s384_s9, %s384_s9, %s385_s10  }
   0xa   :  { %372 = dma.done.wait [#allocation4], 4096  }
   0xb   :  { %373 = vsyncadd [#allocation4], 4294963200 }
   0xc   :  { %374 = dma.done.wait [#allocation7], 4096  }
   0xd   :  { %375 = vsyncadd [#allocation7], 4294963200  ;;  %v87_v0 = vld [vmem:[#allocation3 + $0xf0] sm:$0xff]  ;;  %v88_v1 = vld [vmem:[#allocation3 + $0xf8] sm:$0xff]  ;;  %s386_s12 = smov [#allocation9]   ;;  %s251_s16 = sshll.u32 %s450_s6, 4  ;;  %s252_s16 = int_to_ptr.hbm [resolvable:$true] %s251_s16 }
   0xe   :  { %v85_v2 = vld [vmem:[#allocation3 + $0xe0] sm:$0xff]  ;;  %95 = vmatpush.msra.mxu0 %v87_v0  ;;  %115 = vmatpush.msra.mxu1 %v88_v1  ;;  %v86_v3 = vld [vmem:[#allocation3 + $0xe8] sm:$0xff]  ;;  %v83_v4 = vld [vmem:[#allocation3 + $0xd0] sm:$0xff]  ;;  %s249_s13 = sshll.u32 %s386_s12, 4  ;;  %s387_s18 = smov [#allocation8]   ;;  %s250_s13 = int_to_ptr.vmem [resolvable:$true] %s249_s13 }
   0xf   :  { %v84_v5 = vld [vmem:[#allocation3 + $0xd8] sm:$0xff]  ;;  %v81_v6 = vld [vmem:[#allocation3 + $0xc0] sm:$0xff]  ;;  %v82_v7 = vld [vmem:[#allocation3 + $0xc8] sm:$0xff]  ;;  %s238_s19 = sshll.u32 %s387_s18, 4  ;;  %s240_s22 = sshll.u32 %s449_s5, 4  ;;  %s239_s19 = int_to_ptr.vmem [resolvable:$true] %s238_s19  ;;  %s241_s22 = int_to_ptr.hbm [resolvable:$true] %s240_s22 }
  0x10   :  { %96 = vmatpush.msra.mxu0 %v85_v2  ;;  %116 = vmatpush.msra.mxu1 %v86_v3  ;;  %v79_v8 = vld [vmem:[#allocation3 + $0xb0] sm:$0xff]  ;;  %v80_v9 = vld [vmem:[#allocation3 + $0xb8] sm:$0xff]  ;;  %v77_v10 = vld [vmem:[#allocation3 + $0xa0] sm:$0xff] }
  0x11   :  { %v78_v11 = vld [vmem:[#allocation3 + $0xa8] sm:$0xff]  ;;  %v75_v12 = vld [vmem:[#allocation3 + $0x90] sm:$0xff]  ;;  %v76_v13 = vld [vmem:[#allocation3 + $0x98] sm:$0xff] }
  0x12   :  { %97 = vmatpush.msra.mxu0 %v83_v4  ;;  %117 = vmatpush.msra.mxu1 %v84_v5  ;;  %v154_v14 = vld [vmem:[#allocation6 + $0x78] sm:$0xff]  ;;  %v153_v16 = vld [vmem:[#allocation6 + $0x70] sm:$0xff]  ;;  %v73_v17 = vld [vmem:[#allocation3 + $0x80] sm:$0xff] }
  0x13   :  { %v170_v15 = vld [vmem:[#allocation6 + $0xf8] sm:$0xff]  ;;  %v74_v18 = vld [vmem:[#allocation3 + $0x88] sm:$0xff]  ;;  %171 = vmatpush.msra.mxu2 %v154_v14  ;;  %v169_v19 = vld [vmem:[#allocation6 + $0xf0] sm:$0xff] }
  0x14   :  { %98 = vmatpush.msra.mxu0 %v81_v6  ;;  %118 = vmatpush.msra.mxu1 %v82_v7  ;;  %v152_v20 = vld [vmem:[#allocation6 + $0x68] sm:$0xff]  ;;  %v71_v22 = vld [vmem:[#allocation3 + $0x70] sm:$0xff]  ;;  %v72_v23 = vld [vmem:[#allocation3 + $0x78] sm:$0xff] }
  0x15   :  { %191 = vmatpush.msra.mxu3 %v170_v15  ;;  %v168_v21 = vld [vmem:[#allocation6 + $0xe8] sm:$0xff]  ;;  %172 = vmatpush.msra.mxu2 %v153_v16  ;;  %v151_v24 = vld [vmem:[#allocation6 + $0x60] sm:$0xff]  ;;  %v150_v28 = vld [vmem:[#allocation6 + $0x58] sm:$0xff] }
  0x16   :  { %99 = vmatpush.msra.mxu0 %v79_v8  ;;  %119 = vmatpush.msra.mxu1 %v80_v9  ;;  %v167_v25 = vld [vmem:[#allocation6 + $0xe0] sm:$0xff]  ;;  %v70_v27 = vld [vmem:[#allocation3 + $0x68] sm:$0xff]  ;;  %v166_v29 = vld [vmem:[#allocation6 + $0xd8] sm:$0xff] }
  0x17   :  { %192 = vmatpush.msra.mxu3 %v169_v19  ;;  %v69_v26 = vld [vmem:[#allocation3 + $0x60] sm:$0xff]  ;;  %173 = vmatpush.msra.mxu2 %v152_v20  ;;  %v67_v30 = vld [vmem:[#allocation3 + $0x50] sm:$0xff]  ;;  %v68_v31 = vld [vmem:[#allocation3 + $0x58] sm:$0xff] }
  0x18   :  { %100 = vmatpush.msra.mxu0 %v77_v10  ;;  %120 = vmatpush.msra.mxu1 %v78_v11  ;;  %v149_v32 = vld [vmem:[#allocation6 + $0x50] sm:$0xff]  ;;  %v65_v34 = vld [vmem:[#allocation3 + $0x40] sm:$0xff]  ;;  %v66_v35 = vld [vmem:[#allocation3 + $0x48] sm:$0xff] }
  0x19   :  { %193 = vmatpush.msra.mxu3 %v168_v21  ;;  %174 = vmatpush.msra.mxu2 %v151_v24  ;;  %v165_v33 = vld [vmem:[#allocation6 + $0xd0] sm:$0xff]  ;;  %v148_v36 = vld [vmem:[#allocation6 + $0x48] sm:$0xff]  ;;  %v64_v39 = vld [vmem:[#allocation3 + $0x38] sm:$0xff] }
  0x1a   :  { %101 = vmatpush.msra.mxu0 %v75_v12  ;;  %121 = vmatpush.msra.mxu1 %v76_v13  ;;  %v164_v37 = vld [vmem:[#allocation6 + $0xc8] sm:$0xff]  ;;  %v63_v38 = vld [vmem:[#allocation3 + $0x30] sm:$0xff]  ;;  %v147_v40 = vld [vmem:[#allocation6 + $0x40] sm:$0xff] }
  0x1b   :  { %194 = vmatpush.msra.mxu3 %v167_v25  ;;  %175 = vmatpush.msra.mxu2 %v150_v28  ;;  %v163_v41 = vld [vmem:[#allocation6 + $0xc0] sm:$0xff]  ;;  %v62_v43 = vld [vmem:[#allocation3 + $0x28] sm:$0xff]  ;;  %v146_v44 = vld [vmem:[#allocation6 + $0x38] sm:$0xff] }
  0x1c   :  { %102 = vmatpush.msra.mxu0 %v73_v17  ;;  %122 = vmatpush.msra.mxu1 %v74_v18  ;;  %v61_v42 = vld [vmem:[#allocation3 + $0x20] sm:$0xff]  ;;  %v162_v45 = vld [vmem:[#allocation6 + $0xb8] sm:$0xff]  ;;  %v59_v46 = vld [vmem:[#allocation3 + $0x10] sm:$0xff] }
  0x1d   :  { %195 = vmatpush.msra.mxu3 %v166_v29  ;;  %176 = vmatpush.msra.mxu2 %v149_v32  ;;  %v60_v47 = vld [vmem:[#allocation3 + $0x18] sm:$0xff]  ;;  %v145_v48 = vld [vmem:[#allocation6 + $0x30] sm:$0xff]  ;;  %v57_v50 = vld [vmem:[#allocation3] sm:$0xff] }
  0x1e   :  { %103 = vmatpush.msra.mxu0 %v71_v22  ;;  %123 = vmatpush.msra.mxu1 %v72_v23  ;;  %v161_v49 = vld [vmem:[#allocation6 + $0xb0] sm:$0xff]  ;;  %v58_v51 = vld [vmem:[#allocation3 + $0x8] sm:$0xff]  ;;  %v56_v52 = vld [vmem:[%s444_s0] sm:$0xff] }
  0x1f   :  { %196 = vmatpush.msra.mxu3 %v165_v33  ;;  %177 = vmatpush.msra.mxu2 %v148_v36  ;;  %v144_v53 = vld [vmem:[#allocation6 + $0x28] sm:$0xff]  ;;  %v143_v55 = vld [vmem:[#allocation6 + $0x20] sm:$0xff]  ;;  %v142_v57 = vld [vmem:[#allocation6 + $0x18] sm:$0xff] }
  0x20   :  { %104 = vmatpush.msra.mxu0 %v69_v26  ;;  %124 = vmatpush.msra.mxu1 %v70_v27  ;;  %v160_v54 = vld [vmem:[#allocation6 + $0xa8] sm:$0xff]  ;;  %v159_v56 = vld [vmem:[#allocation6 + $0xa0] sm:$0xff]  ;;  %v158_v58 = vld [vmem:[#allocation6 + $0x98] sm:$0xff] }
  0x21   :  { %197 = vmatpush.msra.mxu3 %v164_v37  ;;  %178 = vmatpush.msra.mxu2 %v147_v40  ;;  %v141_v59 = vld [vmem:[#allocation6 + $0x10] sm:$0xff]  ;;  %v140_v61 = vld [vmem:[#allocation6 + $0x8] sm:$0xff]  ;;  %v139_v63 = vld [vmem:[#allocation6] sm:$0xff] }
  0x22   :  { %105 = vmatpush.msra.mxu0 %v67_v30  ;;  %125 = vmatpush.msra.mxu1 %v68_v31  ;;  %v157_v60 = vld [vmem:[#allocation6 + $0x90] sm:$0xff]  ;;  %v156_v62 = vld [vmem:[#allocation6 + $0x88] sm:$0xff]  ;;  %v155_v0 = vld [vmem:[#allocation6 + $0x80] sm:$0xff] }
  0x23   :  { %198 = vmatpush.msra.mxu3 %v163_v41  ;;  %179 = vmatpush.msra.mxu2 %v146_v44  ;;  %v89_v1 = vld [vmem:[%s446_s2] sm:$0x3] }
  0x24   :  { %106 = vmatpush.msra.mxu0 %v65_v34  ;;  %126 = vmatpush.msra.mxu1 %v66_v35  ;;  %v91_v2 = vperm.slane %v89_v1, 0  ;;  %v92_v3 = vperm.slane %v89_v1, 1  ;;  %v275_v10 = vld [vmem:[%s448_s4] ss:$0 sm:$0xff] }
  0x25   :  { %199 = vmatpush.msra.mxu3 %v162_v45  ;;  %180 = vmatpush.msra.mxu2 %v145_v48 }
  0x26   :  { %107 = vmatpush.msra.mxu0 %v63_v38  ;;  %127 = vmatpush.msra.mxu1 %v64_v39 }
  0x27   :  { %200 = vmatpush.msra.mxu3 %v161_v49  ;;  %181 = vmatpush.msra.mxu2 %v144_v53 }
  0x28   :  { %108 = vmatpush.msra.mxu0 %v61_v42  ;;  %128 = vmatpush.msra.mxu1 %v62_v43 }
  0x29   :  { %201 = vmatpush.msra.mxu3 %v160_v54  ;;  %182 = vmatpush.msra.mxu2 %v143_v55 }
  0x2a   :  { %109 = vmatpush.msra.mxu0 %v59_v46  ;;  %129 = vmatpush.msra.mxu1 %v60_v47 }
  0x2b   :  { %202 = vmatpush.msra.mxu3 %v159_v56  ;;  %183 = vmatpush.msra.mxu2 %v142_v57 }
  0x2c   :  { %110 = vmatpush.msra.mxu0 %v57_v50  ;;  %130 = vmatpush.msra.mxu1 %v58_v51 }
  0x2d   :  { %111 = vmatmul.f32.vlgmr.msra.gmra.mxu0 %v56_v52  ;;  %131 = vmatmul.f32.vlgmr.msra.gmra.mxu1 %v56_v52 }
  0x2e   :  { %203 = vmatpush.msra.mxu3 %v158_v58  ;;  %184 = vmatpush.msra.mxu2 %v141_v59 }
  0x30   :  { %204 = vmatpush.msra.mxu3 %v157_v60  ;;  %185 = vmatpush.msra.mxu2 %v140_v61 }
  0x32   :  { %205 = vmatpush.msra.mxu3 %v156_v62  ;;  %186 = vmatpush.msra.mxu2 %v139_v63 }
  0x34   :  { %206 = vmatpush.msra.mxu3 %v155_v0 }
  0xaa   :  { %v112_v4 = vpop.f32.mrf.mxu0  ;;  %v132_v5 = vpop.f32.mrf.mxu1 }
  0xab   :  { %v113_v6 = vadd.f32 %v112_v4, %v91_v2  ;;  %v133_v7 = vadd.f32 %v132_v5, %v92_v3 }
  0xad   :  { %v135_v8 = vmax.f32 %v113_v6, 0.0  ;;  %v136_v9 = vmax.f32 %v133_v7, 0.0 }
  0xaf   :  { %137 = vst [vmem:[#allocation9] sm:$0xff] %v135_v8  ;;  %187 = vmatmul.f32.vlgmr.msra.gmra.mxu2 %v135_v8  ;;  %207 = vmatmul.f32.vlgmr.msra.gmra.mxu3 %v136_v9 }
  0xb0   :  { %138 = vst [vmem:[#allocation9 + $0x8] sm:$0xff] %v136_v9 }
  0xb1   :  { %254 = dma.vmem_to_hbm [thread:$0]  %s250_s13, 256, %s252_s16, [#allocation10]  }
 0x132   :  { %v188_v11 = vpop.f32.mrf.mxu2  ;;  %v208_v12 = vpop.f32.mrf.mxu3 }
 0x133   :  { %v209_v13 = vadd.f32 %v208_v12, %v188_v11 }
 0x135   :  { %v231_v14 = vadd.f32 %v275_v10, %v209_v13 }
 0x137   :  { %232 = vst [vmem:[#allocation8] sm:$0xff] %v231_v14 }
 0x138   :  { %243 = dma.vmem_to_hbm [thread:$0]  %s239_s19, 128, %s241_s22, [#allocation5]  }
 0x139   :  { %376 = dma.done.wait [#allocation5], 128  }
 0x13a   :  { %377 = vsyncadd [#allocation5], 4294967168 }
 0x13b   :  { %378 = dma.done.wait [#allocation10], 256  }
 0x13c   :  { %379 = vsyncadd [#allocation10], 4294967040 }
 0x13d   :  { %263 = vsyncpa [#allocation4], 1 }
 0x13e   :  { %264 = vsyncpa [#allocation7], 1 }
 0x13f   :  { %265 = vsyncpa [#allocation5], 1 }
 0x140   :  { %266 = vsyncpa [#allocation10], 1 }

</bundles_post_ra>
